<compile_context>
chip_gen: v6e
topology: v6e:2x2x1
jax: 0.10.0
libtpu: 0.0.40
codegen_flags: <defaults>
</compile_context>

<pallas_src>
import functools

import jax
import jax.numpy as jnp
from jax.experimental import pallas as pl
from jax.experimental.pallas import tpu as pltpu


def _round_up(x, m):
    return ((x + m - 1) // m) * m


def _choose_tile_n(n, hwp):
    """Pick the batch-tile (sublane) size from a VMEM budget; >=2 grid steps."""
    live_tiles = 8                      # 2 in + 2 out pipeline bufs + ~4 temps
    budget = 36 * 1024 * 1024           # conservative: fits v7x 64 MiB/TC
    tn = budget // (live_tiles * hwp * 4)
    tn = max(8, (tn // 8) * 8)
    tn = min(tn, 2048)
    if n > 8:
        # Keep at least 2 grid steps so ("parallel",) can use both v7x
        # TensorCores (1-TC chips are unaffected).
        tn = min(tn, max(8, (((n + 1) // 2) // 8) * 8))
    return tn


def _gauss_blur_kernel(wm_ref, x_ref, o_ref, *, ksize, W, HWp):
    """Separable Gaussian blur on a (TN, H*W) lane-dense tile.

    wm_ref : (2*ksize, HWp) f32 per-lane weighted tap masks (resident VMEM):
             rows [0, ksize)       -> vertical taps  dy = -k..k (shift dy*W)
             rows [ksize, 2*ksize) -> horizontal taps dx = -k..k (shift dx)
             Each row holds gauss[tap] where the shifted pixel lies inside the
             image ("same" zero padding), 0 otherwise.
    x_ref  : (TN, HWp) input tile (N slices on sublanes, flat image on lanes).
    o_ref  : (TN, HWp) output tile.
    """
    k = ksize // 2
    x = x_ref[...].astype(jnp.float32)
    wm = wm_ref[...]

    def row(i):                          # (1, HWp) weighted-mask row
        return wm[i:i + 1, :]

    def sep_pass(v, base, step):
        # out[j] = sum_d wmask[d][j] * v[j + d*step]; rolls go to the XLU slot,
        # boundary handling is already folded into the per-lane weights.
        acc = row(base + k) * v
        for d in range(1, k + 1):
            acc = acc + row(base + k + d) * pltpu.roll(v, (-d * step) % HWp, axis=1)
            acc = acc + row(base + k - d) * pltpu.roll(v, (d * step) % HWp, axis=1)
        return acc

    tmp = sep_pass(x, 0, W)              # vertical pass (whole-row shifts)
    out = sep_pass(tmp, ksize, 1)        # horizontal pass
    o_ref[...] = out.astype(o_ref.dtype)


def learnable_gaussian_forward(x, sigma, kernel_size=5, donate_input=False):
    """Pallas implementation of LearnableGaussian.forward.

    x: (B, T, C, H, W); sigma: scalar learnable parameter (init_sigma=1.0).
    donate_input=True aliases the flattened input to the output
    (input_output_aliases) to halve the op's HBM footprint -- only enable it
    when the caller does not need x afterwards (otherwise XLA inserts a copy).
    """
    B, T, C, H, W = x.shape
    k = kernel_size // 2
    N = B * T * C
    HW = H * W
    HWp = _round_up(HW, 128)

    # sigma -> normalized 1-D taps (|sigma| clamped so gauss/sum != 0/0).
    sigma = jnp.maximum(jnp.abs(jnp.asarray(sigma, jnp.float32)), 1e-4)
    coords = jnp.arange(-k, k + 1, dtype=jnp.float32)
    gauss = jnp.exp(-0.5 * (coords / sigma) ** 2)
    gauss = gauss / jnp.sum(gauss)

    # Per-lane weighted tap masks: fold "same" zero-padding validity and the
    # tap weight into one f32 vector per tap (no in-kernel pads or selects).
    lane = jnp.arange(HWp, dtype=jnp.int32)
    h_idx = lane // W
    w_idx = lane % W
    in_img = lane < HW
    rows = []
    for d in range(-k, k + 1):           # vertical taps
        ok = in_img & (h_idx + d >= 0) & (h_idx + d < H)
        rows.append(jnp.where(ok, gauss[d + k], jnp.float32(0.0)))
    for d in range(-k, k + 1):           # horizontal taps
        ok = in_img & (w_idx + d >= 0) & (w_idx + d < W)
        rows.append(jnp.where(ok, gauss[d + k], jnp.float32(0.0)))
    wmasks = jnp.stack(rows, axis=0)     # (2*kernel_size, HWp) f32

    # Natural layout: (N, H*W) is a free reshape (no HBM transpose passes).
    xf = x.reshape(N, HW)
    if HWp != HW:
        xf = jnp.pad(xf, ((0, 0), (0, HWp - HW)))

    TN = _choose_tile_n(N, HWp)
    NP = _round_up(N, TN)
    if NP != N:
        xf = jnp.pad(xf, ((0, NP - N), (0, 0)))

    kern = functools.partial(_gauss_blur_kernel, ksize=kernel_size, W=W, HWp=HWp)
    out = pl.pallas_call(
        kern,
        out_shape=jax.ShapeDtypeStruct((NP, HWp), x.dtype),
        grid=(NP // TN,),
        in_specs=[
            # Weighted tap masks: constant block -> fetched once, stays resident.
            pl.BlockSpec((2 * kernel_size, HWp), lambda n: (0, 0)),
            pl.BlockSpec((TN, HWp), lambda n: (n, 0)),
        ],
        out_specs=pl.BlockSpec((TN, HWp), lambda n: (n, 0)),
        compiler_params=pltpu.CompilerParams(
            dimension_semantics=("parallel",),
            vmem_limit_bytes=48 * 1024 * 1024),
        input_output_aliases=({1: 0} if donate_input else {}),
    )(wmasks, xf)

    if NP != N or HWp != HW:
        out = out[:N, :HW]
    return out.reshape(B, T, C, H, W)


def _reference_forward(x, sigma, kernel_size=5):
    """Pure-JAX reference matching F.conv2d(x, kernel, padding=k, groups=1)."""
    B, T, C, H, W = x.shape
    k = kernel_size // 2
    coords = jnp.arange(-k, k + 1, dtype=jnp.float32)
    gauss = jnp.exp(-0.5 * (coords / sigma) ** 2)
    gauss = gauss / jnp.sum(gauss)
    kernel2d = jnp.outer(gauss, gauss)
    xf = x.reshape(-1, 1, H, W)
    out = jax.lax.conv_general_dilated(
        xf, kernel2d[None, None], window_strides=(1, 1),
        padding=[(k, k), (k, k)],
        dimension_numbers=("NCHW", "OIHW", "NCHW"))
    return out.reshape(B, T, C, H, W)


if __name__ == "__main__":
    # Deterministic parameter init (module __init__: sigma = init_sigma = 1.0).
    sigma = jnp.float32(1.0)

    key = jax.random.PRNGKey(0)
    B, T, C, H, W = 2, 3, 4, 16, 16
    x = jax.random.normal(key, (B, T, C, H, W), dtype=jnp.float32)

    y = jax.block_until_ready(learnable_gaussian_forward(x, sigma, kernel_size=5))
    y_ref = jax.block_until_ready(_reference_forward(x, sigma, kernel_size=5))

    assert y.shape == (B, T, C, H, W)
    assert jnp.allclose(y, y_ref, atol=1e-5, rtol=1e-5), "mismatch vs reference"

    print("KERNEL_OK")
</pallas_src>

<mosaic_0001>
module attributes {stable_mosaic.version = 11 : i64} {
  func.func @_gauss_blur_kernel(%arg0: i32, %arg1: memref<10x256xf32, #tpu.memory_space<vmem>>, %arg2: memref<8x256xf32, #tpu.memory_space<vmem>>, %arg3: memref<8x256xf32, #tpu.memory_space<vmem>>) attributes {dimension_semantics = [#tpu.dimension_semantics<parallel>], iteration_bounds = array<i64: 3>, scalar_prefetch = 0 : i64, scratch_operands = 0 : i64, tpu.core_type = #tpu.core_type<tc>, window_params = [{pipeline_mode = #tpu.pipeline_mode<synchronous>, transform_indices = @transform_0, window_bounds = array<i64: 10, 256>}, {transform_indices = @transform_1, window_bounds = array<i64: 8, 256>}, {transform_indices = @transform_2, window_bounds = array<i64: 8, 256>}]} {
    %c0 = arith.constant 0 : index
    %c0_0 = arith.constant 0 : index
    %0 = vector.load %arg2[%c0, %c0_0] : memref<8x256xf32, #tpu.memory_space<vmem>>, vector<8x256xf32>
    %c0_1 = arith.constant 0 : index
    %c0_2 = arith.constant 0 : index
    %1 = vector.load %arg1[%c0_1, %c0_2] : memref<10x256xf32, #tpu.memory_space<vmem>>, vector<10x256xf32>
    %2 = vector.extract_strided_slice %1 {offsets = [2, 0], sizes = [1, 256], strides = [1, 1]} : vector<10x256xf32> to vector<1x256xf32>
    %3 = vector.broadcast %2 : vector<1x256xf32> to vector<8x256xf32>
    %4 = arith.mulf %3, %0 : vector<8x256xf32>
    %5 = vector.extract_strided_slice %1 {offsets = [3, 0], sizes = [1, 256], strides = [1, 1]} : vector<10x256xf32> to vector<1x256xf32>
    %c240_i32 = arith.constant 240 : i32
    %6 = tpu.dynamic_rotate %0 by %c240_i32 dim 1 : vector<8x256xf32>, i32 -> vector<8x256xf32>
    %7 = vector.broadcast %5 : vector<1x256xf32> to vector<8x256xf32>
    %8 = arith.mulf %7, %6 : vector<8x256xf32>
    %9 = arith.addf %4, %8 : vector<8x256xf32>
    %10 = vector.extract_strided_slice %1 {offsets = [1, 0], sizes = [1, 256], strides = [1, 1]} : vector<10x256xf32> to vector<1x256xf32>
    %c16_i32 = arith.constant 16 : i32
    %11 = tpu.dynamic_rotate %0 by %c16_i32 dim 1 : vector<8x256xf32>, i32 -> vector<8x256xf32>
    %12 = vector.broadcast %10 : vector<1x256xf32> to vector<8x256xf32>
    %13 = arith.mulf %12, %11 : vector<8x256xf32>
    %14 = arith.addf %9, %13 : vector<8x256xf32>
    %15 = vector.extract_strided_slice %1 {offsets = [4, 0], sizes = [1, 256], strides = [1, 1]} : vector<10x256xf32> to vector<1x256xf32>
    %c224_i32 = arith.constant 224 : i32
    %16 = tpu.dynamic_rotate %0 by %c224_i32 dim 1 : vector<8x256xf32>, i32 -> vector<8x256xf32>
    %17 = vector.broadcast %15 : vector<1x256xf32> to vector<8x256xf32>
    %18 = arith.mulf %17, %16 : vector<8x256xf32>
    %19 = arith.addf %14, %18 : vector<8x256xf32>
    %20 = vector.extract_strided_slice %1 {offsets = [0, 0], sizes = [1, 256], strides = [1, 1]} : vector<10x256xf32> to vector<1x256xf32>
    %c32_i32 = arith.constant 32 : i32
    %21 = tpu.dynamic_rotate %0 by %c32_i32 dim 1 : vector<8x256xf32>, i32 -> vector<8x256xf32>
    %22 = vector.broadcast %20 : vector<1x256xf32> to vector<8x256xf32>
    %23 = arith.mulf %22, %21 : vector<8x256xf32>
    %24 = arith.addf %19, %23 : vector<8x256xf32>
    %25 = vector.extract_strided_slice %1 {offsets = [7, 0], sizes = [1, 256], strides = [1, 1]} : vector<10x256xf32> to vector<1x256xf32>
    %26 = vector.broadcast %25 : vector<1x256xf32> to vector<8x256xf32>
    %27 = arith.mulf %26, %24 : vector<8x256xf32>
    %28 = vector.extract_strided_slice %1 {offsets = [8, 0], sizes = [1, 256], strides = [1, 1]} : vector<10x256xf32> to vector<1x256xf32>
    %c255_i32 = arith.constant 255 : i32
    %29 = tpu.dynamic_rotate %24 by %c255_i32 dim 1 : vector<8x256xf32>, i32 -> vector<8x256xf32>
    %30 = vector.broadcast %28 : vector<1x256xf32> to vector<8x256xf32>
    %31 = arith.mulf %30, %29 : vector<8x256xf32>
    %32 = arith.addf %27, %31 : vector<8x256xf32>
    %33 = vector.extract_strided_slice %1 {offsets = [6, 0], sizes = [1, 256], strides = [1, 1]} : vector<10x256xf32> to vector<1x256xf32>
    %c1_i32 = arith.constant 1 : i32
    %34 = tpu.dynamic_rotate %24 by %c1_i32 dim 1 : vector<8x256xf32>, i32 -> vector<8x256xf32>
    %35 = vector.broadcast %33 : vector<1x256xf32> to vector<8x256xf32>
    %36 = arith.mulf %35, %34 : vector<8x256xf32>
    %37 = arith.addf %32, %36 : vector<8x256xf32>
    %38 = vector.extract_strided_slice %1 {offsets = [9, 0], sizes = [1, 256], strides = [1, 1]} : vector<10x256xf32> to vector<1x256xf32>
    %c254_i32 = arith.constant 254 : i32
    %39 = tpu.dynamic_rotate %24 by %c254_i32 dim 1 : vector<8x256xf32>, i32 -> vector<8x256xf32>
    %40 = vector.broadcast %38 : vector<1x256xf32> to vector<8x256xf32>
    %41 = arith.mulf %40, %39 : vector<8x256xf32>
    %42 = arith.addf %37, %41 : vector<8x256xf32>
    %43 = vector.extract_strided_slice %1 {offsets = [5, 0], sizes = [1, 256], strides = [1, 1]} : vector<10x256xf32> to vector<1x256xf32>
    %c2_i32 = arith.constant 2 : i32
    %44 = tpu.dynamic_rotate %24 by %c2_i32 dim 1 : vector<8x256xf32>, i32 -> vector<8x256xf32>
    %45 = vector.broadcast %43 : vector<1x256xf32> to vector<8x256xf32>
    %46 = arith.mulf %45, %44 : vector<8x256xf32>
    %47 = arith.addf %42, %46 : vector<8x256xf32>
    %c0_3 = arith.constant 0 : index
    %c0_4 = arith.constant 0 : index
    %48 = vector.load %arg3[%c0_3, %c0_4] : memref<8x256xf32, #tpu.memory_space<vmem>>, vector<8x256xf32>
    tpu.vector_store %arg3[%c0_3, %c0_4], %47 {strides = array<i32>} : memref<8x256xf32, #tpu.memory_space<vmem>>, vector<8x256xf32>,
    return
  }
  func.func @transform_0(%arg0: i32) -> (i32, i32) {
    %c0_i32 = arith.constant 0 : i32
    %c0_i32_0 = arith.constant 0 : i32
    %c0_i32_1 = arith.constant 0 : i32
    return %c0_i32, %c0_i32_0 : i32, i32
  }
  func.func @transform_1(%arg0: i32) -> (i32, i32) {
    %c0_i32 = arith.constant 0 : i32
    %c0_i32_0 = arith.constant 0 : i32
    return %arg0, %c0_i32 : i32, i32
  }
  func.func @transform_2(%arg0: i32) -> (i32, i32) {
    %c0_i32 = arith.constant 0 : i32
    %c0_i32_0 = arith.constant 0 : i32
    return %arg0, %c0_i32 : i32, i32
  }
}

</mosaic_0001>

<bundles_post_ra>
// kernel: tpu_custom_call.1
= control target key start
LH: loop header
LB: loop body
LE: loop exit
PB: predicated region body
PF: predicated region fallthrough
CT: control target
= control target key end

     0   :  { %7 = vsyncpa [#allocation3], 0  ;;  %s917_s0 = inlined_call_operand.hbm [shape: f32[10,256], index: 0, kind: input, shape index: {}]   ;;  %s918_s1 = inlined_call_operand.hbm [shape: f32[24,256], index: 1, kind: input, shape index: {}]   ;;  %s919_s2 = inlined_call_operand.hbm [shape: f32[24,256], index: 2, kind: output, shape index: {}]  }
   0x1   :  { %8 = vsyncpa [#allocation6], 0 }
   0x2   :  { %10 = vsyncpa [#allocation6 + $0x1], 0 }
   0x3   :  { %11 = vsyncpa [#allocation4], 0 }
   0x4   :  { %13 = vsyncpa [#allocation4 + $0x1], 0  ;;  %s691_s9 = smov 0   ;;  %s693_s10 = smov 0  }
   0x5   :  { %s695_s11 = smov 0   ;;  %s697_s12 = smov 0  }
   0x6 LB: > { %s712_s13 = sadd.s32 4294967295, %s661_s12   ;;  %s454_s14 = sadd.s32 4294967294, %s661_s12   ;;  %s661_s12 = sphi %s697_s12, %s940_s12   ;;  %s657_s11 = sphi %s695_s11, %s939_s11   ;;  %s653_s10 = sphi %s693_s10, %s938_s10   ;;  %s649_s9 = sphi %s691_s9, %s937_s9  }
   0x7   : > { %p60_p0 = scmp.ne.s32.totalorder %s653_s10, %s649_s9  ;;  %p920_p1 = scmp.eq.s32.totalorder %s712_s13, 0 }
   0x8   : > { %p90_p3 = scmp.eq.s32.totalorder %s454_s14, 2  ;;  %p455_p5 = scmp.ge.s32.totalorder %s661_s12, 1 }
   0x9   : > { %p721_p4 = por %p920_p1, %p60_p0  ;;  %p97_p7 = scmp.lt.s32.totalorder %s661_s12, 4 }
   0xa   : > { %p726_p6 = por %p90_p3, %p60_p0  ;;  %s663_s18 = smov [#allocation2]  }
   0xb   : > { %s924_s15 = scalar_select %p721_p4, 1, 0 }
   0xc   : > { %s925_s16 = scalar_select %p726_p6, 1, 0 }
   0xd   : > { %p731_p8 = pnand %p455_p5, %p97_p7  ;;  %s109_s19 = sshll.u32 %s663_s18, 4  ;;  %s110_s19 = int_to_ptr.vmem [resolvable:$true] %s109_s19 }
   0xe   : > { %s744_s21 = sadd.s32 1, %s661_s12   ;;  %s47_s22 = sadd.s32 1, %s657_s11 }
   0xf   : > { %s926_s17 = scalar_select %p731_p8, 1, 0 }
  0x10   : > { %p480_p9 = pneg %p731_p8  ;;  %s44_s23 = ssub.s32 %s661_s12, %s744_s21 }
  0x11   : > { %s550_s24 = scalar_lea.vmem %s110_s19, 512  ;;  %p558_p3 = scmp.lt.s32.totalorder %s110_s19, %s110_s19 }
  0x12   : > { %p739_p10 = pnand %p480_p9, %p920_p1  ;;  %p551_p12 = scmp.ne.s32.totalorder %s110_s19, %s550_s24 }
  0x13   : > { %p559_p5 = scmp.lt.s32.totalorder %s550_s24, %s550_s24 }
  0x14   : > { %p541_p11 = pneg %p739_p10 }
  0x15   : > { %p560_p7 = por %p559_p5, %p558_p3 }
  0x16   : > { %p553_p13 = pnand %p551_p12, %p541_p11 }
  0x18   : > { %p554_p0 = pneg %p553_p13 }
  0x1a   : > { %p561_p2 = pnand %p560_p7, %p554_p0 }
  0x1c   : > { %564 = shalt.err (!%p561_p2)
}
  0x1d   : > { %s664_s25 = smov 256   ;;  %s665_s26 = smov 16  }
  0x1e   : > { %483 = dma.hbm_to_vmem [thread:$0]  (!%p739_p10), %s917_s0, 512, %s110_s19, [#allocation3], %s664_s25, %s664_s25, %s665_s26  }
  0x1f   : > { %p45_p9 = scmp.eq.s32.totalorder %s44_s23, 0  ;;  %p54_p11 = scmp.ne.s32.totalorder %s657_s11, %s653_s10 }
  0x20   : > { %p55_p12 = scmp.eq.s32.totalorder %s661_s12, 0  ;;  %p493_p2 = scmp.lt.s32.totalorder %s661_s12, 3 }
  0x21   : > { %s761_s29 = scalar_select %p45_p9, %s657_s11, %s47_s22  }
  0x22   : > { %p56_p13 = por %p55_p12, %p54_p11  ;;  %p928_p0 = scmp.eq.s32.totalorder %s712_s13, 2 }
  0x23   : > { %s123_s3 = sand.u32 1, %s657_s11   ;;  %s470_s4 = sshll.u32 %s661_s12, 8 }
  0x24   : > { %p765_p3 = por %p928_p0, %p54_p11  ;;  %s458_s5 = sshll.u32 %s123_s3, 4 }
  0x25   : > { %s774_s8 = scalar_lea.hbm %s918_s1, %s470_s4  ;;  %s127_s14 = scalar_lea.vmem [#allocation5], %s458_s5 }
  0x26   : > { %s929_s30 = scalar_select %p765_p3, 1, 0 }
  0x27   : > { %s135_s18 = sshll.u32 %s127_s14, 4  ;;  %p776_p10 = pnand %p493_p2, %p56_p13  ;;  %s136_s18 = int_to_ptr.vmem [resolvable:$true] %s135_s18 }
  0x28   : > { %s124_s20 = scalar_lea.sflag [#allocation6], %s123_s3  ;;  %s565_s22 = scalar_lea.hbm %s774_s8, 256 }
  0x29   : > { %p566_p5 = scmp.ne.s32.totalorder %s774_s8, %s565_s22  ;;  %p567_p7 = pneg %p776_p10 }
  0x2a   : > { %s570_s25 = scalar_lea.hbm %s918_s1, 768  ;;  %p571_p12 = scmp.lt.s32.totalorder %s774_s8, %s918_s1 }
  0x2b   : > { %p568_p9 = pnand %p567_p7, %p566_p5  ;;  %p572_p2 = scmp.lt.s32.totalorder %s570_s25, %s565_s22 }
  0x2d   : > { %p569_p11 = pneg %p568_p9  ;;  %p573_p13 = por %p572_p2, %p571_p12 }
  0x2f   : > { %p574_p0 = pnand %p573_p13, %p569_p11 }
  0x31   : > { %577 = shalt.err (!%p574_p0)
}
  0x32   : > { %s578_s28 = scalar_lea.vmem %s136_s18, 256  ;;  %s666_s3 = smov [#allocation5]  }
  0x33   : > { %p579_p1 = scmp.ne.s32.totalorder %s136_s18, %s578_s28  ;;  %s583_s4 = sshll.u32 %s666_s3, 4  ;;  %s584_s4 = int_to_ptr.vmem [resolvable:$false] %s583_s4 }
  0x34   : > { %s585_s5 = scalar_lea.vmem %s584_s4, 512  ;;  %p586_p5 = scmp.lt.s32.totalorder %s136_s18, %s584_s4 }
  0x35   : > { %p581_p6 = pnand %p579_p1, %p567_p7  ;;  %p587_p9 = scmp.lt.s32.totalorder %s585_s5, %s578_s28 }
  0x37   : > { %p582_p3 = pneg %p581_p6  ;;  %p588_p4 = por %p587_p9, %p586_p5 }
  0x39   : > { %p589_p8 = pnand %p588_p4, %p582_p3 }
  0x3b   : > { %592 = shalt.err (!%p589_p8)
}
  0x3c   : > { %487 = dma.hbm_to_vmem [thread:$0]  (!%p776_p10), %s774_s8, 256, %s136_s18, %s124_s20  }
  0x3d   : > { %p931_p11 = scmp.ne.s32.totalorder %s926_s17, 0 }
  0x3e   : > { %p932_p12 = scmp.eq.s32.totalorder (!%p931_p11), %s712_s13, 0 }
  0x3f   : > { %144 = sbr.rel (%p931_p11) target bundleno = 351 (0x15f), region = 28 }
  0x44   : > { %636 = dma.done.wait (%p932_p12), [#allocation3], 512   ;;  %p933_p1 = pmov %p932_p12 }
  0x45   : > { %s801_s6 = sand.u32 1, %s653_s10   ;;  %p934_p4 = scmp.ne.s32.totalorder %s924_s15, 0 }
  0x46   : > { %638 = vsyncadd (%p933_p1), [#allocation3], 4294966784  ;;  %s463_s7 = sshll.u32 %s801_s6, 4  ;;  %s151_s14 = scalar_lea.sflag [#allocation6], %s801_s6 }
  0x47   : > { %s154_s8 = scalar_lea.vmem [#allocation5], %s463_s7 }
  0x48   : > { %640 = dma.done.wait (%p934_p4), %s151_s14, 256  }
  0x49   : > { %642 = vsyncadd (%p934_p4), %s151_s14, 4294967040  ;;  %v175_v0 = vld [vmem:[%s154_s8] sm:$0xff]  ;;  %s667_s17 = smov 16   ;;  %s668_s18 = smov 112   ;;  %v176_v1 = vld [vmem:[%s154_s8 + $0x8] sm:$0xff]  ;;  %v181_v2 = vlaneseq }
  0x4a   : > { %212 = vrot.lane.b32.xlu1 %v175_v0, %s667_s17  ;;  %191 = vrot.lane.b32.xlu0 %v175_v0, %s668_s18  ;;  %s669_s19 = smov 96   ;;  %s670_s20 = smov 32   ;;  %v814_v5 = vld [vmem:[#allocation2] sm:$0xff]  ;;  %v816_v6 = vld [vmem:[#allocation2 + $0x8] sm:$0xff]  ;;  %v179_v56 = vld [vmem:[#allocation2 + $0x10] sm:$0x3] }
  0x4b   : > { %v811_v3 = vshrl.u32 %v181_v2, 7  ;;  %v818_v7 = vand.u32 127, %v181_v2  ;;  %s671_s15 = smov 127   ;;  %s672_s22 = smov 1   ;;  %v180_v57 = vld [vmem:[#allocation2 + $0x18] sm:$0x3] }
  0x4c   : > { %s673_s23 = smov 126   ;;  %s674_s24 = smov 2  }
  0x4d   : > { %v183_v4 = vsub.s32 2, %v811_v3  ;;  %v202_v8 = vsub.s32 3, %v811_v3  ;;  %v822_v11 = vsub.s32 1, %v811_v3  ;;  %vm216_vm0 = vcmp.lt.s32.totalorder %v818_v7, 16  ;;  %s471_s25 = sshll.u32 %s712_s13, 8  ;;  %s174_s26 = scalar_lea.vmem [#allocation7], %s463_s7 }
  0x4e   : > { %214 = vrot.lane.b32.xlu1 %v176_v1, %s667_s17  ;;  %193 = vrot.lane.b32.xlu0 %v176_v1, %s668_s18  ;;  %vm197_vm1 = vcmp.lt.s32.totalorder %v818_v7, 112  ;;  %v240_v16 = vsub.s32 4, %v811_v3  ;;  %vm235_vm2 = vcmp.lt.s32.totalorder %v818_v7, 96  ;;  %v833_v17 = vsub.s32 0, %v811_v3  ;;  %s372_s27 = sshll.u32 %s174_s26, 4  ;;  %s881_s4 = scalar_lea.hbm %s919_s2, %s471_s25  ;;  %s373_s27 = int_to_ptr.vmem [resolvable:$true] %s372_s27 }
  0x4f   : > { %v184_v12 = vrot.slane %v814_v5, %v183_v4  ;;  %v188_v13 = vrot.slane %v816_v6, %v183_v4  ;;  %v203_v14 = vrot.slane %v814_v5, %v202_v8  ;;  %v207_v15 = vrot.slane %v816_v6, %v202_v8  ;;  %s358_s5 = scalar_lea.sflag [#allocation4], %s801_s6  ;;  %s593_s13 = scalar_lea.vmem %s373_s27, 256 }
  0x50   : > { %v222_v18 = vrot.slane %v814_v5, %v822_v11  ;;  %v226_v19 = vrot.slane %v816_v6, %v822_v11  ;;  %v241_v30 = vrot.slane %v814_v5, %v240_v16  ;;  %v245_v31 = vrot.slane %v816_v6, %v240_v16  ;;  %p594_p6 = scmp.ne.s32.totalorder %s373_s27, %s593_s13  ;;  %p935_p8 = scmp.ne.s32.totalorder %s929_s30, 0 }
  0x51   : > { %v190_v21 = vmul.f32 %v188_v13, %v176_v1  ;;  %v189_v23 = vmul.f32 %v184_v12, %v175_v0  ;;  %vm254_vm3 = vcmp.lt.s32.totalorder %v818_v7, 32  ;;  %v260_v40 = vrot.slane %v814_v5, %v833_v17  ;;  %s675_s7 = smov [#allocation7]  }
  0x52   : > { %233 = vrot.lane.b32.xlu1 %v176_v1, %s669_s19  ;;  %231 = vrot.lane.b32.xlu0 %v175_v0, %s669_s19  ;;  %v264_v41 = vrot.slane %v816_v6, %v833_v17  ;;  %v271_v59 = vsub.s32 7, %v811_v3  ;;  %vm283_vm4 = vcmp.lt.s32.totalorder %v818_v7, 127  ;;  %v307_v61 = vsub.s32 6, %v811_v3  ;;  %p595_p3 = pnand %p594_p6, %p935_p8  ;;  %s597_s14 = sshll.u32 %s675_s7, 4  ;;  %s598_s14 = int_to_ptr.vmem [resolvable:$false] %s597_s14 }
  0x53   : > { %v289_v62 = vrot.slane %v179_v56, %v833_v17  ;;  %v293_v63 = vrot.slane %v180_v57, %v833_v17  ;;  %vm302_vm5 = vcmp.lt.s32.totalorder %v818_v7, 1  ;;  %vm321_vm6 = vcmp.lt.s32.totalorder %v818_v7, 126  ;;  %s599_s8 = scalar_lea.vmem %s598_s14, 512  ;;  %p600_p7 = scmp.lt.s32.totalorder %s373_s27, %s598_s14 }
  0x54   : > { %v272_v2 = vrot.slane %v814_v5, %v271_v59  ;;  %v276_v4 = vrot.slane %v816_v6, %v271_v59  ;;  %vm340_vm7 = vcmp.lt.s32.totalorder %v818_v7, 2  ;;  %p596_p10 = pneg %p595_p3  ;;  %p601_p2 = scmp.lt.s32.totalorder %s599_s8, %s593_s13 }
  0x56   : > { %252 = vrot.lane.b32.xlu1 %v176_v1, %s670_s20  ;;  %250 = vrot.lane.b32.xlu0 %v175_v0, %s670_s20  ;;  %p602_p13 = por %p601_p2, %p600_p7 }
  0x58   : > { %p603_p0 = pnand %p602_p13, %p596_p10 }
  0xbc   : > { %v213_v9 = vpop.permute.xlu1 %212  ;;  %v192_v10 = vpop.permute.xlu0 %191 }
  0xc0   : > { %v215_v20 = vpop.permute.xlu1 %214  ;;  %v194_v22 = vpop.permute.xlu0 %193 }
  0xc1   : > { %v217_v24 = vsel %vm216_vm0, %v213_v9, %v215_v20  ;;  %v218_v25 = vsel %vm216_vm0, %v215_v20, %v213_v9  ;;  %v198_v26 = vsel %vm197_vm1, %v192_v10, %v194_v22  ;;  %v199_v27 = vsel %vm197_vm1, %v194_v22, %v192_v10 }
  0xc2   : > { %v208_v28 = vmul.f32 %v203_v14, %v198_v26  ;;  %v209_v29 = vmul.f32 %v207_v15, %v199_v27  ;;  %v227_v32 = vmul.f32 %v222_v18, %v218_v25  ;;  %v228_v33 = vmul.f32 %v226_v19, %v217_v24 }
  0xc3   : > { %v308_v9 = vrot.slane %v814_v5, %v307_v61  ;;  %v312_v10 = vrot.slane %v816_v6, %v307_v61  ;;  %v345_v15 = vsub.s32 5, %v811_v3  ;;  %v327_v18 = vrot.slane %v179_v56, %v822_v11 }
  0xc4   : > { %v210_v34 = vadd.f32 %v208_v28, %v189_v23  ;;  %v211_v35 = vadd.f32 %v209_v29, %v190_v21  ;;  %v234_v36 = vpop.permute.xlu1 %233  ;;  %v232_v37 = vpop.permute.xlu0 %231  ;;  %v331_v19 = vrot.slane %v180_v57, %v822_v11 }
  0xc5   : > { %v236_v38 = vsel %vm235_vm2, %v232_v37, %v234_v36  ;;  %v237_v39 = vsel %vm235_vm2, %v234_v36, %v232_v37  ;;  %v346_v3 = vrot.slane %v814_v5, %v345_v15  ;;  %v350_v28 = vrot.slane %v816_v6, %v345_v15 }
  0xc6   : > { %v230_v42 = vadd.f32 %v228_v33, %v211_v35  ;;  %v229_v43 = vadd.f32 %v227_v32, %v210_v34  ;;  %v246_v44 = vmul.f32 %v241_v30, %v236_v38  ;;  %v247_v45 = vmul.f32 %v245_v31, %v237_v39 }
  0xc8   : > { %v253_v46 = vpop.permute.xlu1 %252  ;;  %v251_v47 = vpop.permute.xlu0 %250  ;;  %v248_v50 = vadd.f32 %v246_v44, %v229_v43  ;;  %v249_v51 = vadd.f32 %v247_v45, %v230_v42 }
  0xc9   : > { %v255_v48 = vsel %vm254_vm3, %v251_v47, %v253_v46  ;;  %v256_v49 = vsel %vm254_vm3, %v253_v46, %v251_v47 }
  0xca   : > { %v265_v52 = vmul.f32 %v260_v40, %v256_v49  ;;  %v266_v53 = vmul.f32 %v264_v41, %v255_v48 }
  0xcc   : > { %v267_v54 = vadd.f32 %v265_v52, %v248_v50  ;;  %v268_v55 = vadd.f32 %v266_v53, %v249_v51 }
  0xce   : > { %281 = vrot.lane.b32.xlu1 %v268_v55, %s671_s15  ;;  %279 = vrot.lane.b32.xlu0 %v267_v54, %s671_s15  ;;  %v278_v20 = vmul.f32 %v276_v4, %v268_v55  ;;  %v277_v21 = vmul.f32 %v272_v2, %v267_v54 }
  0xd2   : > { %300 = vrot.lane.b32.xlu1 %v268_v55, %s672_s22  ;;  %298 = vrot.lane.b32.xlu0 %v267_v54, %s672_s22 }
  0xd6   : > { %319 = vrot.lane.b32.xlu1 %v268_v55, %s673_s23  ;;  %317 = vrot.lane.b32.xlu0 %v267_v54, %s673_s23 }
  0xda   : > { %338 = vrot.lane.b32.xlu1 %v268_v55, %s674_s24  ;;  %336 = vrot.lane.b32.xlu0 %v267_v54, %s674_s24 }
 0x140   : > { %v282_v58 = vpop.permute.xlu1 %281  ;;  %v280_v60 = vpop.permute.xlu0 %279 }
 0x141   : > { %v284_v0 = vsel %vm283_vm4, %v280_v60, %v282_v58  ;;  %v285_v1 = vsel %vm283_vm4, %v282_v58, %v280_v60 }
 0x142   : > { %v294_v16 = vmul.f32 %v289_v62, %v284_v0  ;;  %v295_v17 = vmul.f32 %v293_v63, %v285_v1 }
 0x144   : > { %v301_v8 = vpop.permute.xlu1 %300  ;;  %v299_v12 = vpop.permute.xlu0 %298  ;;  %v296_v29 = vadd.f32 %v294_v16, %v277_v21  ;;  %v297_v30 = vadd.f32 %v295_v17, %v278_v20 }
 0x145   : > { %v303_v13 = vsel %vm302_vm5, %v299_v12, %v301_v8  ;;  %v304_v14 = vsel %vm302_vm5, %v301_v8, %v299_v12 }
 0x146   : > { %v313_v22 = vmul.f32 %v308_v9, %v304_v14  ;;  %v314_v23 = vmul.f32 %v312_v10, %v303_v13 }
 0x148   : > { %v320_v24 = vpop.permute.xlu1 %319  ;;  %v318_v25 = vpop.permute.xlu0 %317  ;;  %v315_v32 = vadd.f32 %v313_v22, %v296_v29  ;;  %v316_v33 = vadd.f32 %v314_v23, %v297_v30 }
 0x149   : > { %v322_v26 = vsel %vm321_vm6, %v318_v25, %v320_v24  ;;  %v323_v27 = vsel %vm321_vm6, %v320_v24, %v318_v25 }
 0x14a   : > { %v332_v31 = vmul.f32 %v327_v18, %v322_v26  ;;  %v333_v11 = vmul.f32 %v331_v19, %v323_v27 }
 0x14c   : > { %v339_v34 = vpop.permute.xlu1 %338  ;;  %v337_v35 = vpop.permute.xlu0 %336  ;;  %v334_v5 = vadd.f32 %v332_v31, %v315_v32  ;;  %v335_v6 = vadd.f32 %v333_v11, %v316_v33 }
 0x14d   : > { %v341_v36 = vsel %vm340_vm7, %v337_v35, %v339_v34  ;;  %v342_v37 = vsel %vm340_vm7, %v339_v34, %v337_v35 }
 0x14e   : > { %v351_v38 = vmul.f32 %v346_v3, %v342_v37  ;;  %v352_v39 = vmul.f32 %v350_v28, %v341_v36 }
 0x150   : > { %v353_v40 = vadd.f32 %v351_v38, %v334_v5  ;;  %v354_v41 = vadd.f32 %v352_v39, %v335_v6 }
 0x152   : > { %355 = vst [vmem:[%s174_s26] sm:$0xff] %v353_v40  ;;  %356 = vst [vmem:[%s174_s26 + $0x8] sm:$0xff] %v354_v41 }
 0x153   : > { %606 = shalt.err (!%p603_p0)
}
 0x154   : > { %s607_s17 = scalar_lea.hbm %s881_s4, 256  ;;  %s611_s19 = scalar_lea.hbm %s919_s2, 768 }
 0x155   : > { %p608_p5 = scmp.ne.s32.totalorder %s881_s4, %s607_s17  ;;  %p612_p12 = scmp.lt.s32.totalorder %s881_s4, %s919_s2 }
 0x156   : > { %p613_p1 = scmp.lt.s32.totalorder %s611_s19, %s607_s17 }
 0x157   : > { %p609_p9 = pnand %p608_p5, %p935_p8 }
 0x158   : > { %p614_p4 = por %p613_p1, %p612_p12 }
 0x159   : > { %p610_p11 = pneg %p609_p9 }
 0x15b   : > { %p615_p6 = pnand %p614_p4, %p610_p11 }
 0x15d   : > { %618 = shalt.err (!%p615_p6)
}
 0x15e   : > { %478 = dma.vmem_to_hbm [thread:$0]  (%p935_p8), %s373_s27, 256, %s881_s4, %s358_s5  }
 0x15f PF: > { %p495_p3 = scmp.ge.s32.totalorder %s661_s12, 2  ;;  %s384_s22 = sand.u32 1, %s649_s9  }
 0x160   : > { %p936_p10 = scmp.ne.s32.totalorder %s925_s16, 0  ;;  %s385_s23 = scalar_lea.sflag [#allocation4], %s384_s22 }
 0x162   : > { %p489_p7 = pnand %p495_p3, %p936_p10 }
 0x164   : > { %p490_p2 = pneg %p489_p7 }
 0x166   : > { %644 = dma.done.wait (%p490_p2), %s385_s23, 256  }
 0x167   : > { %646 = vsyncadd (%p490_p2), %s385_s23, 4294967040  ;;  %p16_p13 = scmp.ge.s32.totalorder %s744_s21, 5   ;;  %s937_s9 = smov %s653_s10 }
 0x168   : > { %s938_s10 = smov %s657_s11  ;;  %s939_s11 = smov %s761_s29 }
 0x169   : > { %s940_s12 = smov %s744_s21  ;;  %18 = sbr.rel (!%p16_p13) target bundleno = 6 (0x6), region = 78 }
 0x16e   :  { %390 = vsyncpa [#allocation3], 1 }
 0x16f   :  { %392 = vsyncpa [#allocation3 + $0x1], 1 }
 0x170   :  { %393 = vsyncpa [#allocation6], 1 }
 0x171   :  { %395 = vsyncpa [#allocation6 + $0x1], 1 }
 0x172   :  { %396 = vsyncpa [#allocation4], 1 }
 0x173   :  { %398 = vsyncpa [#allocation4 + $0x1], 1 }

</bundles_post_ra>
